<compile_context>
chip_gen: v5e
topology: v5e:2x2
jax: 0.10.0
libtpu: 0.0.40
codegen_flags: <defaults>
</compile_context>

<pallas_src>
import functools

import numpy as np

import jax
import jax.numpy as jnp
from jax import lax
from jax.experimental import pallas as pl
from jax.experimental.pallas import tpu as pltpu


# --- filter constructors (same math as the PyTorch module) -------------------
def get_gaussian_kernel(k=3, mu=0, sigma=3, normalize=True):
    gaussian_1D = np.linspace(-1, 1, k)
    x, y = np.meshgrid(gaussian_1D, gaussian_1D)
    distance = (x ** 2 + y ** 2) ** 0.5
    gaussian_2D = np.exp(-(distance - mu) ** 2 / (2 * sigma ** 2))
    gaussian_2D = gaussian_2D / (2 * np.pi * sigma ** 2)
    if normalize:
        gaussian_2D = gaussian_2D / np.sum(gaussian_2D)
    return gaussian_2D


def get_sobel_kernel(k=3):
    rng = np.linspace(-(k // 2), k // 2, k)
    x, y = np.meshgrid(rng, rng)
    sobel_2D_numerator = x
    sobel_2D_denominator = x ** 2 + y ** 2
    sobel_2D_denominator[:, k // 2] = 1
    sobel_2D = sobel_2D_numerator / sobel_2D_denominator
    return sobel_2D


# --- trace-time separable factorisations (numpy) ------------------------------
def _sobel_smooth_factors(sob):
    """sobel_2D == outer(smooth, [-1, 0, 1])  ->  return smooth, else None."""
    sob = np.asarray(sob, np.float64)
    if sob.shape != (3, 3):
        return None
    if (np.allclose(sob[:, 1], 0.0, atol=1e-12)
            and np.allclose(sob[:, 0], -sob[:, 2], atol=1e-12)):
        return tuple(float(v) for v in sob[:, 2])
    return None


def _rank1_factor(k3):
    """k3 == outer(u, u) (true for the mu=0 gaussian)  ->  return u, else None."""
    k3 = np.asarray(k3, np.float64)
    if k3.shape != (3, 3) or k3[1, 1] <= 0.0:
        return None
    u = k3[1, :] / np.sqrt(k3[1, 1])
    if np.allclose(np.outer(u, u), k3, rtol=1e-7, atol=1e-12):
        return tuple(float(v) for v in u)
    return None


# --- Pallas kernel ------------------------------------------------------------
def _edge_kernel(x_ref, o_ref, mean_ref, mag_ref, *,
                 sobel_smooth, sobel_taps, gauss_u, gauss_taps):
    """One grid step: NB images, packed side by side along the lane axis.

    x_ref:    (NB, C, H, W)        unpadded input block
    o_ref:    (NB, 1, H, W)        blurred gradient magnitude (single channel)
    mean_ref: (H+2, NB*(W+2)) f32  zero-bordered channel sums, lane-packed
    mag_ref:  (H+2, NB*(W+2)) f32  zero-bordered |grad|,       lane-packed
    """
    NB, C, H, W = x_ref.shape
    Wp = W + 2
    PW = NB * Wp

    # Re-zero the packed scratch planes (cheap).  Only image interiors are
    # written below, so every 1-px border that provides the convs' zero
    # padding stays exactly zero, independent of grid scheduling.
    mean_ref[...] = jnp.zeros_like(mean_ref)
    mag_ref[...] = jnp.zeros_like(mag_ref)

    # Per-image channel sum -> interior slot of the packed plane.
    # (The 1/C normalisation is folded into the sobel taps.)
    for b in range(NB):
        acc = x_ref[b, 0].astype(jnp.float32)
        for c in range(1, C):
            acc = acc + x_ref[b, c].astype(jnp.float32)
        off = b * Wp
        mean_ref[1:1 + H, off + 1:off + 1 + W] = acc

    P = mean_ref

    # ---- Sobel x / y over the whole packed plane (VPU stencils) ----
    if sobel_smooth is not None:
        s0, s1, s2 = sobel_smooth                                           # already / C
        # vertical smoothing -> horizontal +-1 difference -> gx
        vs = s0 * P[0:H, :] + s1 * P[1:1 + H, :] + s2 * P[2:2 + H, :]       # (H, PW)
        gx = vs[:, 2:PW] - vs[:, 0:PW - 2]                                  # (H, PW-2)
        # horizontal smoothing -> vertical +-1 difference -> gy
        hs = s0 * P[:, 0:PW - 2] + s1 * P[:, 1:PW - 1] + s2 * P[:, 2:PW]    # (H+2, PW-2)
        gy = hs[2:2 + H, :] - hs[0:H, :]                                    # (H, PW-2)
    else:
        wx, wy = sobel_taps                                                 # already / C
        gx = jnp.zeros((H, PW - 2), jnp.float32)
        gy = jnp.zeros((H, PW - 2), jnp.float32)
        for kh in range(3):
            rows = P[kh:kh + H, :]
            for kw in range(3):
                cx, cy = wx[kh][kw], wy[kh][kw]
                if cx == 0.0 and cy == 0.0:
                    continue
                patch = rows[:, kw:kw + PW - 2]
                if cx != 0.0:
                    gx = gx + cx * patch
                if cy != 0.0:
                    gy = gy + cy * patch

    mag = jnp.sqrt(gx * gx + gy * gy)                                       # (H, PW-2)

    # Store only each image's interior: the pad columns between images carry
    # meaningless (finite) values and must not overwrite the zero border that
    # supplies the gaussian's zero padding.
    for b in range(NB):
        off = b * Wp
        mag_ref[1:1 + H, off + 1:off + 1 + W] = mag[:, off:off + W]

    M = mag_ref

    # ---- Gaussian blur of the zero-padded gradient magnitude ----
    if gauss_u is not None:
        g0, g1, g2 = gauss_u
        gh = g0 * M[:, 0:PW - 2] + g1 * M[:, 1:PW - 1] + g2 * M[:, 2:PW]    # (H+2, PW-2)
        blur = g0 * gh[0:H, :] + g1 * gh[1:1 + H, :] + g2 * gh[2:2 + H, :]  # (H, PW-2)
    else:
        blur = jnp.zeros((H, PW - 2), jnp.float32)
        for kh in range(3):
            rows = M[kh:kh + H, :]
            for kw in range(3):
                g = gauss_taps[kh][kw]
                if g == 0.0:
                    continue
                blur = blur + g * rows[:, kw:kw + PW - 2]

    # Single-channel output: every channel of the PyTorch output is identical.
    for b in range(NB):
        off = b * Wp
        o_ref[b, 0] = blur[:, off:off + W].astype(o_ref.dtype)


# --- wrapper ------------------------------------------------------------------
def _pick_images_per_step(N, W, lane_budget=1024):
    """# images packed along lanes per grid step.

    Keep >= 2 grid steps when possible (v7x has 2 TensorCores to feed) and cap
    the packed plane width so the working arrays stay a handful of vregs."""
    cap = max(1, lane_budget // (W + 2))
    best = 1
    for nb in range(1, N + 1):
        if N % nb != 0 or nb > cap:
            continue
        if N >= 2 and N // nb < 2:
            continue
        best = nb
    return best


def generate_edge1_forward(img, sobel_2D, gaussian_2D, images_per_step=None):
    """img: [N, C, H, W] -> [N, C, H, W] (matches the PyTorch module)."""
    N, C, H, W = img.shape
    NB = images_per_step if images_per_step is not None else _pick_images_per_step(N, W)
    assert N % NB == 0, (N, NB)
    Wp = W + 2

    inv_c = 1.0 / C
    sobel_np = np.asarray(sobel_2D, np.float64)
    gauss_np = np.asarray(gaussian_2D, np.float64)

    smooth = _sobel_smooth_factors(sobel_np)
    if smooth is not None:
        sobel_smooth = tuple(v * inv_c for v in smooth)
        sobel_taps = None
    else:
        sobel_smooth = None
        sobel_taps = (tuple(tuple(float(v) * inv_c for v in r) for r in sobel_np),
                      tuple(tuple(float(v) * inv_c for v in r) for r in sobel_np.T))

    gauss_u = _rank1_factor(gauss_np)
    gauss_taps = None if gauss_u is not None else tuple(
        tuple(float(v) for v in r) for r in gauss_np)

    kernel = functools.partial(
        _edge_kernel, sobel_smooth=sobel_smooth, sobel_taps=sobel_taps,
        gauss_u=gauss_u, gauss_taps=gauss_taps)

    out1 = pl.pallas_call(
        kernel,
        out_shape=jax.ShapeDtypeStruct((N, 1, H, W), img.dtype),
        grid_spec=pltpu.PrefetchScalarGridSpec(
            num_scalar_prefetch=0,
            grid=(N // NB,),
            in_specs=[pl.BlockSpec((NB, C, H, W), lambda g: (g, 0, 0, 0))],
            out_specs=pl.BlockSpec((NB, 1, H, W), lambda g: (g, 0, 0, 0)),
            scratch_shapes=[
                pltpu.VMEM((H + 2, NB * Wp), jnp.float32),   # packed channel sums
                pltpu.VMEM((H + 2, NB * Wp), jnp.float32),   # packed |grad|
            ],
        ),
        compiler_params=pltpu.CompilerParams(
            dimension_semantics=("parallel",),
        ),
    )(img)

    # Every output channel of the module is the same blurred map; broadcast
    # outside the kernel so the kernel's HBM writeback is 1/C of the tensor.
    return jnp.broadcast_to(out1, (N, C, H, W))


# --- pure-JAX reference (mirrors the PyTorch forward exactly) ------------------
def _reference(img, sobel_2D, gaussian_2D):
    B, C, H, W = img.shape
    sx = sobel_2D[None, None]
    sy = sobel_2D.T[None, None]
    g = gaussian_2D[None, None]

    def conv1(x, w):
        return lax.conv_general_dilated(
            x, w, window_strides=(1, 1), padding=[(1, 1), (1, 1)],
            dimension_numbers=("NCHW", "OIHW", "NCHW"))

    gx = jnp.zeros((B, 1, H, W), jnp.float32)
    gy = jnp.zeros((B, 1, H, W), jnp.float32)
    for c in range(C):
        gx = gx + conv1(img[:, c:c + 1], sx)
        gy = gy + conv1(img[:, c:c + 1], sy)
    gx, gy = gx / C, gy / C
    mag = jnp.sqrt(gx ** 2 + gy ** 2)
    blurred_1 = conv1(mag, g)
    return jnp.broadcast_to(blurred_1, (B, C, H, W))


if __name__ == "__main__":
    # generate_edge1(k_gaussian=3, mu=0, sigma=1, k_sobel=3)
    gaussian_2D = get_gaussian_kernel(3, 0, 1)
    sobel_2D = get_sobel_kernel(3)
    sobel_j = jnp.asarray(sobel_2D, jnp.float32)
    gauss_j = jnp.asarray(gaussian_2D, jnp.float32)

    # Primary test shape (NB = 1, grid = (2,)).
    N, C, H, W = 2, 4, 16, 16
    img = jax.random.normal(jax.random.PRNGKey(0), (N, C, H, W), jnp.float32)
    out = jax.block_until_ready(generate_edge1_forward(img, sobel_2D, gaussian_2D))
    ref = _reference(img, sobel_j, gauss_j)
    assert out.shape == (N, C, H, W)
    assert jnp.allclose(out, ref, atol=1e-4, rtol=1e-4), \
        float(jnp.max(jnp.abs(out - ref)))

    # Second shape exercising the lane-packed NB > 1 path (NB = 3, grid = (2,)).
    N2, C2 = 6, 3
    img2 = jax.random.normal(jax.random.PRNGKey(0), (N2, C2, H, W), jnp.float32)
    out2 = jax.block_until_ready(generate_edge1_forward(img2, sobel_2D, gaussian_2D))
    ref2 = _reference(img2, sobel_j, gauss_j)
    assert out2.shape == (N2, C2, H, W)
    assert jnp.allclose(out2, ref2, atol=1e-4, rtol=1e-4), \
        float(jnp.max(jnp.abs(out2 - ref2)))

    print("KERNEL_OK")
</pallas_src>

<mosaic_0001>
module attributes {stable_mosaic.version = 11 : i64} {
  func.func @_edge_kernel(%arg0: i32, %arg1: memref<1x4x16x16xf32, #tpu.memory_space<vmem>>, %arg2: memref<1x1x16x16xf32, #tpu.memory_space<vmem>>, %arg3: memref<18x18xf32, #tpu.memory_space<vmem>>, %arg4: memref<18x18xf32, #tpu.memory_space<vmem>>) attributes {dimension_semantics = [#tpu.dimension_semantics<parallel>], iteration_bounds = array<i64: 2>, scalar_prefetch = 0 : i64, scratch_operands = 2 : i64, tpu.core_type = #tpu.core_type<tc>, window_params = [{transform_indices = @transform_0, window_bounds = array<i64: 1, 4, 16, 16>}, {transform_indices = @transform_1, window_bounds = array<i64: 1, 1, 16, 16>}]} {
    %cst = arith.constant 0.000000e+00 : f32
    %0 = vector.broadcast %cst : f32 to vector<18x18xf32>
    %c0 = arith.constant 0 : index
    %c0_0 = arith.constant 0 : index
    %1 = vector.load %arg3[%c0, %c0_0] : memref<18x18xf32, #tpu.memory_space<vmem>>, vector<18x18xf32>
    tpu.vector_store %arg3[%c0, %c0_0], %0 {strides = array<i32>} : memref<18x18xf32, #tpu.memory_space<vmem>>, vector<18x18xf32>,
    %cst_1 = arith.constant 0.000000e+00 : f32
    %2 = vector.broadcast %cst_1 : f32 to vector<18x18xf32>
    %c0_2 = arith.constant 0 : index
    %c0_3 = arith.constant 0 : index
    %3 = vector.load %arg4[%c0_2, %c0_3] : memref<18x18xf32, #tpu.memory_space<vmem>>, vector<18x18xf32>
    tpu.vector_store %arg4[%c0_2, %c0_3], %2 {strides = array<i32>} : memref<18x18xf32, #tpu.memory_space<vmem>>, vector<18x18xf32>,
    %c0_4 = arith.constant 0 : index
    %c0_5 = arith.constant 0 : index
    %c0_6 = arith.constant 0 : index
    %c0_7 = arith.constant 0 : index
    %4 = vector.load %arg1[%c0_4, %c0_5, %c0_6, %c0_7] : memref<1x4x16x16xf32, #tpu.memory_space<vmem>>, vector<1x1x16x16xf32>
    %5 = vector.shape_cast %4 : vector<1x1x16x16xf32> to vector<16x16xf32>
    %c0_8 = arith.constant 0 : index
    %c1 = arith.constant 1 : index
    %c0_9 = arith.constant 0 : index
    %c0_10 = arith.constant 0 : index
    %6 = vector.load %arg1[%c0_8, %c1, %c0_9, %c0_10] : memref<1x4x16x16xf32, #tpu.memory_space<vmem>>, vector<1x1x16x16xf32>
    %7 = vector.shape_cast %6 : vector<1x1x16x16xf32> to vector<16x16xf32>
    %8 = arith.addf %5, %7 : vector<16x16xf32>
    %c0_11 = arith.constant 0 : index
    %c2 = arith.constant 2 : index
    %c0_12 = arith.constant 0 : index
    %c0_13 = arith.constant 0 : index
    %9 = vector.load %arg1[%c0_11, %c2, %c0_12, %c0_13] : memref<1x4x16x16xf32, #tpu.memory_space<vmem>>, vector<1x1x16x16xf32>
    %10 = vector.shape_cast %9 : vector<1x1x16x16xf32> to vector<16x16xf32>
    %11 = arith.addf %8, %10 : vector<16x16xf32>
    %c0_14 = arith.constant 0 : index
    %c3 = arith.constant 3 : index
    %c0_15 = arith.constant 0 : index
    %c0_16 = arith.constant 0 : index
    %12 = vector.load %arg1[%c0_14, %c3, %c0_15, %c0_16] : memref<1x4x16x16xf32, #tpu.memory_space<vmem>>, vector<1x1x16x16xf32>
    %13 = vector.shape_cast %12 : vector<1x1x16x16xf32> to vector<16x16xf32>
    %14 = arith.addf %11, %13 : vector<16x16xf32>
    %c1_17 = arith.constant 1 : index
    %c1_18 = arith.constant 1 : index
    %15 = vector.load %arg3[%c1_17, %c1_18] : memref<18x18xf32, #tpu.memory_space<vmem>>, vector<16x16xf32>
    tpu.vector_store %arg3[%c1_17, %c1_18], %14 {strides = array<i32>} : memref<18x18xf32, #tpu.memory_space<vmem>>, vector<16x16xf32>,
    %c0_19 = arith.constant 0 : index
    %c0_20 = arith.constant 0 : index
    %16 = vector.load %arg3[%c0_19, %c0_20] : memref<18x18xf32, #tpu.memory_space<vmem>>, vector<16x18xf32>
    %cst_21 = arith.constant 1.250000e-01 : f32
    %17 = vector.broadcast %cst_21 : f32 to vector<16x18xf32>
    %18 = arith.mulf %17, %16 : vector<16x18xf32>
    %c1_22 = arith.constant 1 : index
    %c0_23 = arith.constant 0 : index
    %19 = vector.load %arg3[%c1_22, %c0_23] : memref<18x18xf32, #tpu.memory_space<vmem>>, vector<16x18xf32>
    %cst_24 = arith.constant 2.500000e-01 : f32
    %20 = vector.broadcast %cst_24 : f32 to vector<16x18xf32>
    %21 = arith.mulf %20, %19 : vector<16x18xf32>
    %22 = arith.addf %18, %21 : vector<16x18xf32>
    %c2_25 = arith.constant 2 : index
    %c0_26 = arith.constant 0 : index
    %23 = vector.load %arg3[%c2_25, %c0_26] : memref<18x18xf32, #tpu.memory_space<vmem>>, vector<16x18xf32>
    %cst_27 = arith.constant 1.250000e-01 : f32
    %24 = vector.broadcast %cst_27 : f32 to vector<16x18xf32>
    %25 = arith.mulf %24, %23 : vector<16x18xf32>
    %26 = arith.addf %22, %25 : vector<16x18xf32>
    %27 = vector.extract_strided_slice %26 {offsets = [0, 2], sizes = [16, 16], strides = [1, 1]} : vector<16x18xf32> to vector<16x16xf32>
    %28 = vector.extract_strided_slice %26 {offsets = [0, 0], sizes = [16, 16], strides = [1, 1]} : vector<16x18xf32> to vector<16x16xf32>
    %29 = arith.subf %27, %28 : vector<16x16xf32>
    %c0_28 = arith.constant 0 : index
    %c0_29 = arith.constant 0 : index
    %30 = vector.load %arg3[%c0_28, %c0_29] : memref<18x18xf32, #tpu.memory_space<vmem>>, vector<18x16xf32>
    %cst_30 = arith.constant 1.250000e-01 : f32
    %31 = vector.broadcast %cst_30 : f32 to vector<18x16xf32>
    %32 = arith.mulf %31, %30 : vector<18x16xf32>
    %c0_31 = arith.constant 0 : index
    %c1_32 = arith.constant 1 : index
    %33 = vector.load %arg3[%c0_31, %c1_32] : memref<18x18xf32, #tpu.memory_space<vmem>>, vector<18x16xf32>
    %cst_33 = arith.constant 2.500000e-01 : f32
    %34 = vector.broadcast %cst_33 : f32 to vector<18x16xf32>
    %35 = arith.mulf %34, %33 : vector<18x16xf32>
    %36 = arith.addf %32, %35 : vector<18x16xf32>
    %c0_34 = arith.constant 0 : index
    %c2_35 = arith.constant 2 : index
    %37 = vector.load %arg3[%c0_34, %c2_35] : memref<18x18xf32, #tpu.memory_space<vmem>>, vector<18x16xf32>
    %cst_36 = arith.constant 1.250000e-01 : f32
    %38 = vector.broadcast %cst_36 : f32 to vector<18x16xf32>
    %39 = arith.mulf %38, %37 : vector<18x16xf32>
    %40 = arith.addf %36, %39 : vector<18x16xf32>
    %41 = vector.extract_strided_slice %40 {offsets = [2, 0], sizes = [16, 16], strides = [1, 1]} : vector<18x16xf32> to vector<16x16xf32>
    %42 = vector.extract_strided_slice %40 {offsets = [0, 0], sizes = [16, 16], strides = [1, 1]} : vector<18x16xf32> to vector<16x16xf32>
    %43 = arith.subf %41, %42 : vector<16x16xf32>
    %44 = arith.mulf %29, %29 : vector<16x16xf32>
    %45 = arith.mulf %43, %43 : vector<16x16xf32>
    %46 = arith.addf %44, %45 : vector<16x16xf32>
    %47 = math.sqrt %46 : vector<16x16xf32>
    %c1_37 = arith.constant 1 : index
    %c1_38 = arith.constant 1 : index
    %48 = vector.load %arg4[%c1_37, %c1_38] : memref<18x18xf32, #tpu.memory_space<vmem>>, vector<16x16xf32>
    tpu.vector_store %arg4[%c1_37, %c1_38], %47 {strides = array<i32>} : memref<18x18xf32, #tpu.memory_space<vmem>>, vector<16x16xf32>,
    %c0_39 = arith.constant 0 : index
    %c0_40 = arith.constant 0 : index
    %49 = vector.load %arg4[%c0_39, %c0_40] : memref<18x18xf32, #tpu.memory_space<vmem>>, vector<18x16xf32>
    %cst_41 = arith.constant 0.274068624 : f32
    %50 = vector.broadcast %cst_41 : f32 to vector<18x16xf32>
    %51 = arith.mulf %50, %49 : vector<18x16xf32>
    %c0_42 = arith.constant 0 : index
    %c1_43 = arith.constant 1 : index
    %52 = vector.load %arg4[%c0_42, %c1_43] : memref<18x18xf32, #tpu.memory_space<vmem>>, vector<18x16xf32>
    %cst_44 = arith.constant 0.451862752 : f32
    %53 = vector.broadcast %cst_44 : f32 to vector<18x16xf32>
    %54 = arith.mulf %53, %52 : vector<18x16xf32>
    %55 = arith.addf %51, %54 : vector<18x16xf32>
    %c0_45 = arith.constant 0 : index
    %c2_46 = arith.constant 2 : index
    %56 = vector.load %arg4[%c0_45, %c2_46] : memref<18x18xf32, #tpu.memory_space<vmem>>, vector<18x16xf32>
    %cst_47 = arith.constant 0.274068624 : f32
    %57 = vector.broadcast %cst_47 : f32 to vector<18x16xf32>
    %58 = arith.mulf %57, %56 : vector<18x16xf32>
    %59 = arith.addf %55, %58 : vector<18x16xf32>
    %60 = vector.extract_strided_slice %59 {offsets = [0, 0], sizes = [16, 16], strides = [1, 1]} : vector<18x16xf32> to vector<16x16xf32>
    %cst_48 = arith.constant 0.274068624 : f32
    %61 = vector.broadcast %cst_48 : f32 to vector<16x16xf32>
    %62 = arith.mulf %61, %60 : vector<16x16xf32>
    %63 = vector.extract_strided_slice %59 {offsets = [1, 0], sizes = [16, 16], strides = [1, 1]} : vector<18x16xf32> to vector<16x16xf32>
    %cst_49 = arith.constant 0.451862752 : f32
    %64 = vector.broadcast %cst_49 : f32 to vector<16x16xf32>
    %65 = arith.mulf %64, %63 : vector<16x16xf32>
    %66 = arith.addf %62, %65 : vector<16x16xf32>
    %67 = vector.extract_strided_slice %59 {offsets = [2, 0], sizes = [16, 16], strides = [1, 1]} : vector<18x16xf32> to vector<16x16xf32>
    %cst_50 = arith.constant 0.274068624 : f32
    %68 = vector.broadcast %cst_50 : f32 to vector<16x16xf32>
    %69 = arith.mulf %68, %67 : vector<16x16xf32>
    %70 = arith.addf %66, %69 : vector<16x16xf32>
    %c0_51 = arith.constant 0 : index
    %c0_52 = arith.constant 0 : index
    %c0_53 = arith.constant 0 : index
    %c0_54 = arith.constant 0 : index
    %71 = vector.load %arg2[%c0_51, %c0_52, %c0_53, %c0_54] : memref<1x1x16x16xf32, #tpu.memory_space<vmem>>, vector<1x1x16x16xf32>
    %72 = vector.shape_cast %71 : vector<1x1x16x16xf32> to vector<16x16xf32>
    %73 = vector.shape_cast %70 : vector<16x16xf32> to vector<1x1x16x16xf32>
    tpu.vector_store %arg2[%c0_51, %c0_52, %c0_53, %c0_54], %73 {strides = array<i32>} : memref<1x1x16x16xf32, #tpu.memory_space<vmem>>, vector<1x1x16x16xf32>,
    return
  }
  func.func @transform_0(%arg0: i32) -> (i32, i32, i32, i32) {
    %c0_i32 = arith.constant 0 : i32
    %c0_i32_0 = arith.constant 0 : i32
    %c0_i32_1 = arith.constant 0 : i32
    %c0_i32_2 = arith.constant 0 : i32
    return %arg0, %c0_i32, %c0_i32_0, %c0_i32_1 : i32, i32, i32, i32
  }
  func.func @transform_1(%arg0: i32) -> (i32, i32, i32, i32) {
    %c0_i32 = arith.constant 0 : i32
    %c0_i32_0 = arith.constant 0 : i32
    %c0_i32_1 = arith.constant 0 : i32
    %c0_i32_2 = arith.constant 0 : i32
    return %arg0, %c0_i32, %c0_i32_0, %c0_i32_1 : i32, i32, i32, i32
  }
}

</mosaic_0001>

<bundles_post_ra>
// kernel: tpu_custom_call.1
= control target key start
LH: loop header
LB: loop body
LE: loop exit
PB: predicated region body
PF: predicated region fallthrough
CT: control target
= control target key end

     0   :  { %6 = vsyncpa [#allocation5], 0  ;;  %s816_s0 = inlined_call_operand.hbm [shape: f32[2,4,16,16], index: 0, kind: input, shape index: {}]   ;;  %s817_s1 = inlined_call_operand.hbm [shape: f32[2,1,16,16], index: 1, kind: output, shape index: {}]  }
   0x1   :  { %8 = vsyncpa [#allocation5 + $0x1], 0 }
   0x2   :  { %9 = vsyncpa [#allocation6], 0 }
   0x3   :  { %11 = vsyncpa [#allocation6 + $0x1], 0  ;;  %s662_s6 = smov 0   ;;  %s664_s7 = smov 0  }
   0x4   :  { %s666_s8 = smov 0   ;;  %s668_s9 = smov 0  }
   0x5 LB: > { %s683_s10 = sadd.s32 4294967295, %s641_s9   ;;  %s464_s11 = sadd.s32 4294967294, %s641_s9   ;;  %s641_s9 = sphi %s668_s9, %s827_s9   ;;  %s637_s8 = sphi %s666_s8, %s826_s8   ;;  %s633_s7 = sphi %s664_s7, %s825_s7   ;;  %s629_s6 = sphi %s662_s6, %s824_s6  }
   0x6   : > { %s687_s12 = sadd.s32 1, %s641_s9   ;;  %s24_s13 = sadd.s32 1, %s637_s8 }
   0x7   : > { %s21_s14 = ssub.s32 %s641_s9, %s687_s12  ;;  %p31_p0 = scmp.ne.s32.totalorder %s637_s8, %s633_s7 }
   0x8   : > { %p22_p1 = scmp.eq.s32.totalorder %s21_s14, 0  ;;  %p32_p2 = scmp.eq.s32.totalorder %s641_s9, 0 }
   0x9   : > { %p37_p3 = scmp.ne.s32.totalorder %s633_s7, %s629_s6  ;;  %p38_p4 = scmp.eq.s32.totalorder %s683_s10, 0 }
   0xa   : > { %s699_s15 = scalar_select %p22_p1, %s637_s8, %s24_s13  }
   0xb   : > { %p701_p5 = por %p32_p2, %p31_p0  ;;  %p705_p6 = por %p38_p4, %p37_p3 }
   0xc   : > { %p61_p7 = scmp.eq.s32.totalorder %s683_s10, 1  ;;  %p67_p8 = scmp.eq.s32.totalorder %s464_s11, 1 }
   0xd   : > { %p498_p10 = scmp.lt.s32.totalorder %s641_s9, 2  ;;  %s87_s20 = sand.u32 1, %s637_s8  }
   0xe   : > { %p712_p11 = por %p61_p7, %p31_p0  ;;  %p716_p12 = por %p67_p8, %p37_p3 }
   0xf   : > { %s484_s21 = sshll.u32 %s641_s9, 6  ;;  %s467_s22 = sshll.u32 %s87_s20, 6 }
  0x10   : > { %s96_s25 = scalar_lea.hbm %s816_s0, %s484_s21  ;;  %s91_s27 = scalar_lea.vmem [#allocation4], %s467_s22 }
  0x11   : > { %s97_s26 = sshll.u32 %s96_s25, 4  ;;  %s99_s28 = sshll.u32 %s91_s27, 4  ;;  %s98_s26 = int_to_ptr.hbm [resolvable:$true] %s97_s26  ;;  %s100_s28 = int_to_ptr.vmem [resolvable:$true] %s99_s28 }
  0x12   : > { %p727_p13 = pnand %p498_p10, %p701_p5  ;;  %p470_p0 = scmp.ge.s32.totalorder %s641_s9, 1 }
  0x13   : > { %p107_p1 = scmp.lt.s32.totalorder %s641_s9, 3  ;;  %s88_s30 = scalar_lea.sflag [#allocation5], %s87_s20 }
  0x14   : > { %s545_s2 = sshra.s32 %s98_s26, 4  ;;  %p549_p3 = pneg %p727_p13  ;;  %s546_s2 = int_to_ptr.hbm [resolvable:$true] %s545_s2 }
  0x15   : > { %s547_s3 = scalar_lea.hbm %s546_s2, 64  ;;  %s552_s11 = scalar_lea.hbm %s816_s0, 128 }
  0x16   : > { %p548_p2 = scmp.ne.s32.totalorder %s546_s2, %s547_s3  ;;  %p553_p5 = scmp.lt.s32.totalorder %s546_s2, %s816_s0 }
  0x17   : > { %p554_p8 = scmp.lt.s32.totalorder %s552_s11, %s547_s3 }
  0x18   : > { %p550_p4 = pnand %p549_p3, %p548_p2 }
  0x19   : > { %p555_p10 = por %p554_p8, %p553_p5 }
  0x1a   : > { %p551_p7 = pneg %p550_p4 }
  0x1c   : > { %p556_p9 = pnand %p555_p10, %p551_p7 }
  0x1e   : > { %559 = shalt.err (!%p556_p9)
}
  0x1f   : > { %s643_s16 = smov 128   ;;  %s644_s20 = smov 8  }
  0x20   : > { %493 = dma.hbm_to_vmem [thread:$0]  (!%p727_p13), %s98_s26, 1024, %s100_s28, %s88_s30, %s643_s16, %s643_s16, %s644_s20  }
  0x21   : > { %p108_p2 = pnand %p470_p0, %p107_p1 }
  0x22   : > { %s748_s21 = sand.u32 (!%p108_p2), 1, %s633_s7  }
  0x23   : > { %111 = sbr.rel (%p108_p2) target bundleno = 712 (0x2c8), region = 24  ;;  %s471_s22 = sshll.u32 (!%p108_p2), %s748_s21, 6 }
  0x24   : > { %s114_s23 = scalar_lea.sflag (!%p108_p2), [#allocation5], %s748_s21  ;;  %s117_s24 = scalar_lea.vmem (!%p108_p2), [#allocation4], %s471_s22 }
  0x28   : > { %620 = dma.done.wait (%p705_p6), %s114_s23, 1024  }
  0x29   : > { %622 = vsyncadd (%p705_p6), %s114_s23, 4294966272  ;;  %vm137_vm0 = vcmask 146432   ;;  %v645_v0 = vmov 0.0   ;;  %v145_v1 = vld [vmem:[%s117_s24] sm:$0xff]  ;;  %v473_v2 = vld [vmem:[%s117_s24 + $0x10] sm:$0xff]  ;;  %s646_s25 = smov 1  }
  0x2a   : > { %138 = vst.msk [vmem:[#allocation2] sm:$0xff] %vm137_vm0, %v645_v0  ;;  %v475_v3 = vld [vmem:[%s117_s24 + $0x20] sm:$0xff]  ;;  %v150_v4 = vadd.f32 %v473_v2, %v145_v1  ;;  %v146_v5 = vld [vmem:[%s117_s24 + $0x8] sm:$0xff]  ;;  %v474_v6 = vld [vmem:[%s117_s24 + $0x18] sm:$0xff]  ;;  %vm140_vm1 = vcmask 140288   ;;  %vm170_vm2 = vcmask 138248  }
  0x2b   : > { %139 = vst.msk [vmem:[#allocation2 + $0x8] sm:$0xff] %vm137_vm0, %v645_v0  ;;  %v477_v7 = vld [vmem:[%s117_s24 + $0x30] sm:$0xff]  ;;  %v151_v9 = vadd.f32 %v474_v6, %v146_v5  ;;  %v476_v10 = vld [vmem:[%s117_s24 + $0x28] sm:$0xff]  ;;  %v478_v13 = vld [vmem:[%s117_s24 + $0x38] sm:$0xff]  ;;  %s647_s17 = smov 127   ;;  %s648_s26 = smov 126  }
  0x2c   : > { %142 = vst.msk [vmem:[#allocation3] sm:$0xff] %vm137_vm0, %v645_v0  ;;  %v155_v8 = vadd.f32 %v475_v3, %v150_v4  ;;  %s649_s27 = smov 2   ;;  %vm236_vm3 = vcmask 1041408   ;;  %vm254_vm4 = vcmask 1045504   ;;  %s472_s28 = sshll.u32 %s748_s21, 4  ;;  %vm349_vm9 = vcmask 1046528  }
  0x2d   : > { %143 = vst.msk [vmem:[#allocation3 + $0x8] sm:$0xff] %vm137_vm0, %v645_v0  ;;  %v156_v12 = vadd.f32 %v476_v10, %v151_v9  ;;  %s485_s29 = sshll.u32 %s683_s10, 4  ;;  %s136_s4 = scalar_lea.vmem [#allocation7], %s472_s28  ;;  %vm372_vm10 = vcmask 130048  }
  0x2e   : > { %v160_v11 = vadd.f32 %v477_v7, %v155_v8  ;;  %141 = vst.msk [vmem:[#allocation2 + $0x10] sm:$0x3] %vm140_vm1, %v645_v0  ;;  %s387_s3 = scalar_lea.hbm %s817_s1, %s485_s29  ;;  %s388_s10 = sshll.u32 %s136_s4, 4  ;;  %s389_s10 = int_to_ptr.vmem [resolvable:$true] %s388_s10 }
  0x2f   : > { %v161_v14 = vadd.f32 %v478_v13, %v156_v12  ;;  %144 = vst.msk [vmem:[#allocation3 + $0x10] sm:$0x3] %vm140_vm1, %v645_v0  ;;  %s390_s5 = sshll.u32 %s387_s3, 4  ;;  %s376_s11 = scalar_lea.sflag [#allocation6], %s748_s21  ;;  %s391_s5 = int_to_ptr.hbm [resolvable:$true] %s390_s5 }
  0x30   : > { %164 = vrot.lane.b32.xlu0 %v160_v11, %s646_s25  ;;  %s589_s13 = sshra.s32 %s391_s5, 4  ;;  %s595_s22 = scalar_lea.hbm %s817_s1, 32  ;;  %s590_s13 = int_to_ptr.hbm [resolvable:$true] %s589_s13 }
  0x31   : > { %s591_s14 = scalar_lea.hbm %s590_s13, 16  ;;  %p596_p0 = scmp.lt.s32.totalorder %s590_s13, %s817_s1 }
  0x32   : > { %p592_p6 = scmp.ne.s32.totalorder %s590_s13, %s591_s14  ;;  %p597_p1 = scmp.lt.s32.totalorder %s595_s22, %s591_s14 }
  0x34   : > { %p593_p9 = pnand %p592_p6, %p712_p11  ;;  %p598_p3 = por %p597_p1, %p596_p0 }
  0x36   : > { %p594_p13 = pneg %p593_p9 }
  0x38   : > { %166 = vrot.lane.b32.xlu0 %v161_v14, %s646_s25  ;;  %p599_p4 = pnand %p598_p3, %p594_p13 }
  0xa2   : > { %v165_v15 = vpop.permute.xlu0 %164 }
  0xa3   : > { %171 = vst.msk [vmem:[#allocation2 + $0x1] sm:$0xff] %vm170_vm2, %v165_v15 }
  0xaa   : > { %v167_v16 = vpop.permute.xlu0 %166  ;;  %v173_v17 = vld [vmem:[#allocation2] sm:$0xff] }
  0xab   : > { %172 = vst.msk [vmem:[#allocation2 + $0x9] sm:$0xff] %vm170_vm2, %v167_v16  ;;  %v201_v18 = vmul.f32 0.25, %v173_v17  ;;  %v175_v19 = vmul.f32 0.125, %v173_v17  ;;  %v177_v27 = vld [vmem:[#allocation2 + $0x1] sm:$0xff] }
  0xac   : > { %v179_v30 = vmul.f32 0.25, %v177_v27 }
  0xad   : > { %207 = vrot.lane.b32.xlu1 %v201_v18, %s647_s17  ;;  %222 = vrot.lane.b32.xlu2 %v175_v19, %s648_s26 }
  0xae   : > { %v181_v34 = vadd.f32 %v179_v30, %v175_v19 }
  0xb2   : > { %v199_v20 = vld [vmem:[#allocation2 + $0x10] sm:$0x3]  ;;  %v174_v21 = vld [vmem:[#allocation2 + $0x8] sm:$0xff] }
  0xb3   : > { %v178_v22 = vld [vmem:[#allocation2 + $0x9] sm:$0xff]  ;;  %v203_v23 = vmul.f32 0.25, %v199_v20  ;;  %v202_v24 = vmul.f32 0.25, %v174_v21  ;;  %v176_v25 = vmul.f32 0.125, %v174_v21  ;;  %v200_v36 = vmul.f32 0.125, %v199_v20 }
  0xb4   : > { %v180_v26 = vmul.f32 0.25, %v178_v22  ;;  %v183_v28 = vld [vmem:[#allocation2 + $0x2] sm:$0xff]  ;;  %v184_v29 = vld [vmem:[#allocation2 + $0xa] sm:$0xff] }
  0xb5   : > { %211 = vrot.lane.b32.xlu0 %v203_v23, %s647_s17  ;;  %209 = vrot.lane.b32.xlu1 %v202_v24, %s647_s17  ;;  %v185_v32 = vmul.f32 0.125, %v183_v28  ;;  %v186_v33 = vmul.f32 0.125, %v184_v29 }
  0xb6   : > { %224 = vrot.lane.b32.xlu2 %v176_v25, %s648_s26  ;;  %v182_v31 = vadd.f32 %v180_v26, %v176_v25 }
  0xb7   : > { %v187_v37 = vadd.f32 %v185_v32, %v181_v34 }
  0xb8   : > { %v188_v35 = vadd.f32 %v186_v33, %v182_v31 }
  0xbd   : > { %193 = vrot.lane.b32.xlu0 %v188_v35, %s649_s27  ;;  %226 = vrot.lane.b32.xlu1 %v200_v36, %s648_s26 }
  0xbe   : > { %191 = vrot.lane.b32.xlu2 %v187_v37, %s649_s27 }
 0x107   : > { %v223_v38 = vpop.permute.xlu2 %222 }
 0x110   : > { %v225_v45 = vpop.permute.xlu2 %224 }
 0x118   : > { %v192_v0 = vpop.permute.xlu2 %191 }
 0x119   : > { %v197_v10 = vsub.f32 %v187_v37, %v192_v0 }
 0x11b   : > { %v246_v13 = vmul.f32 %v197_v10, %v197_v10 }
 0x11f   : > { %v208_v39 = vpop.permute.xlu1 %207 }
 0x120   : > { %v216_v40 = vadd.f32 %v208_v39, %v175_v19 }
 0x122   : > { %v231_v41 = vadd.f32 %v223_v38, %v216_v40 }
 0x124   : > { %v237_v42 = vrot.slane %v231_v41, 6 }
 0x126   : > { %v243_v47 = vsub.f32 %v231_v41, %v237_v42 }
 0x127   : > { %v210_v43 = vpop.permute.xlu1 %209  ;;  %v212_v48 = vpop.permute.xlu0 %211 }
 0x128   : > { %v217_v44 = vadd.f32 %v210_v43, %v176_v25  ;;  %v218_v50 = vadd.f32 %v212_v48, %v200_v36  ;;  %v248_v52 = vmul.f32 %v243_v47, %v243_v47 }
 0x12a   : > { %v232_v46 = vadd.f32 %v225_v45, %v217_v44  ;;  %v255_v58 = vrot.slane %v248_v52, 2 }
 0x12c   : > { %v238_v49 = vrot.slane %v232_v46, 6 }
 0x12e   : > { %v239_v51 = vsel %vm236_vm3, %v237_v42, %v238_v49 }
 0x12f   : > { %v244_v53 = vsub.f32 %v232_v46, %v239_v51  ;;  %v227_v54 = vpop.permute.xlu1 %226  ;;  %v194_v1 = vpop.permute.xlu0 %193 }
 0x130   : > { %v233_v55 = vadd.f32 %v227_v54, %v218_v50  ;;  %v198_v2 = vsub.f32 %v188_v35, %v194_v1 }
 0x131   : > { %v249_v56 = vmul.f32 %v244_v53, %v244_v53 }
 0x132   : > { %v245_v57 = vsub.f32 %v233_v55, %v238_v49  ;;  %v247_v3 = vmul.f32 %v198_v2, %v198_v2 }
 0x133   : > { %v256_v59 = vrot.slane %v249_v56, 2 }
 0x134   : > { %v250_v60 = vmul.f32 %v245_v57, %v245_v57 }
 0x135   : > { %v257_v61 = vsel %vm254_vm4, %v255_v58, %v256_v59 }
 0x136   : > { %v258_v62 = vrot.slane %v250_v60, 2  ;;  %260 = vrot.lane.b32.xlu1 %v257_v61, %s649_s27 }
 0x138   : > { %v259_v63 = vsel %vm254_vm4, %v256_v59, %v258_v62 }
 0x139   : > { %262 = vrot.lane.b32.xlu2 %v259_v63, %s649_s27 }
 0x193   : > { %v263_v4 = vpop.permute.xlu2 %262 }
 0x194   : > { %v267_v5 = vadd.f32 %v263_v4, %v247_v3 }
 0x196   : > { %541 = vrsqrt.f32 %v267_v5  ;;  %vm287_vm5 = vcmp.eq.f32.partialorder %v267_v5, inf  ;;  %v290_v16 = vand.u32 2147483648, %v267_v5  ;;  %vm289_vm6 = vcmp.eq.f32.partialorder %v267_v5, 0.0 }
 0x19c   : > { %v542_v6 = vpop.eup %541 }
 0x19d   : > { %v281_v7 = vmul.f32 %v542_v6, %v267_v5 }
 0x19f   : > { %v282_v8 = vmul.f32 %v542_v6, %v281_v7 }
 0x1a1   : > { %v283_v9 = vmul.f32 0.5, %v282_v8 }
 0x1a3   : > { %v284_v11 = vsub.f32 1.5, %v283_v9 }
 0x1a5   : > { %v285_v12 = vmul.f32 %v542_v6, %v284_v11 }
 0x1a7   : > { %v286_v14 = vmul.f32 %v285_v12, %v267_v5 }
 0x1a8   : > { %v261_v15 = vpop.permute.xlu1 %260 }
 0x1a9   : > { %v266_v17 = vadd.f32 %v261_v15, %v246_v13  ;;  %v288_v18 = vsel %vm287_vm5, %v267_v5, %v286_v14 }
 0x1aa   : > { %v291_v19 = vsel %vm289_vm6, %v290_v16, %v288_v18 }
 0x1ab   : > { %543 = vrsqrt.f32 %v266_v17  ;;  %296 = vrot.lane.b32.xlu1 %v291_v19, %s647_s17  ;;  %vm275_vm7 = vcmp.eq.f32.partialorder %v266_v17, inf  ;;  %v278_v27 = vand.u32 2147483648, %v266_v17  ;;  %vm277_vm8 = vcmp.eq.f32.partialorder %v266_v17, 0.0 }
 0x1b1   : > { %v544_v20 = vpop.eup %543 }
 0x1b2   : > { %v269_v21 = vmul.f32 %v544_v20, %v266_v17 }
 0x1b4   : > { %v270_v22 = vmul.f32 %v544_v20, %v269_v21 }
 0x1b6   : > { %v271_v23 = vmul.f32 0.5, %v270_v22 }
 0x1b8   : > { %v272_v24 = vsub.f32 1.5, %v271_v23 }
 0x1ba   : > { %v273_v25 = vmul.f32 %v544_v20, %v272_v24 }
 0x1bc   : > { %v274_v26 = vmul.f32 %v273_v25, %v266_v17 }
 0x1be   : > { %v276_v28 = vsel %vm275_vm7, %v266_v17, %v274_v26 }
 0x1bf   : > { %v279_v29 = vsel %vm277_vm8, %v278_v27, %v276_v28 }
 0x1c0   : > { %294 = vrot.lane.b32.xlu0 %v279_v29, %s647_s17 }
 0x21d   : > { %v297_v30 = vpop.permute.xlu1 %296 }
 0x21e   : > { %301 = vst.msk [vmem:[#allocation3 + $0x9] sm:$0xff] %vm170_vm2, %v297_v30 }
 0x225   : > { %v304_v31 = vld [vmem:[#allocation3 + $0x10] sm:$0x3] }
 0x226   : > { %v310_v32 = vmul.f32 0.45186275, %v304_v31  ;;  %v307_v33 = vmul.f32 0.27406862, %v304_v31 }
 0x228   : > { %318 = vrot.lane.b32.xlu1 %v310_v32, %s647_s17 }
 0x230   : > { %333 = vrot.lane.b32.xlu1 %v307_v33, %s648_s26 }
 0x232   : > { %v295_v34 = vpop.permute.xlu0 %294 }
 0x233   : > { %300 = vst.msk [vmem:[#allocation3 + $0x1] sm:$0xff] %vm170_vm2, %v295_v34 }
 0x23a   : > { %v302_v35 = vld [vmem:[#allocation3] sm:$0xff]  ;;  %v303_v36 = vld [vmem:[#allocation3 + $0x8] sm:$0xff] }
 0x23b   : > { %v308_v37 = vmul.f32 0.45186275, %v302_v35  ;;  %v309_v38 = vmul.f32 0.45186275, %v303_v36  ;;  %v305_v39 = vmul.f32 0.27406862, %v302_v35 }
 0x23c   : > { %v306_v40 = vmul.f32 0.27406862, %v303_v36 }
 0x23d   : > { %314 = vrot.lane.b32.xlu2 %v308_v37, %s647_s17  ;;  %316 = vrot.lane.b32.xlu0 %v309_v38, %s647_s17 }
 0x245   : > { %329 = vrot.lane.b32.xlu2 %v305_v39, %s648_s26  ;;  %331 = vrot.lane.b32.xlu0 %v306_v40, %s648_s26 }
 0x297   : > { %v315_v41 = vpop.permute.xlu2 %314 }
 0x298   : > { %v323_v46 = vadd.f32 %v315_v41, %v305_v39 }
 0x29a   : > { %v319_v42 = vpop.permute.xlu1 %318 }
 0x29b   : > { %v325_v47 = vadd.f32 %v319_v42, %v307_v33 }
 0x29f   : > { %v330_v44 = vpop.permute.xlu2 %329 }
 0x2a0   : > { %v338_v48 = vadd.f32 %v330_v44, %v323_v46 }
 0x2a2   : > { %v334_v45 = vpop.permute.xlu1 %333  ;;  %v343_v52 = vmul.f32 0.45186275, %v338_v48  ;;  %v341_v55 = vmul.f32 0.27406862, %v338_v48 }
 0x2a3   : > { %v340_v49 = vadd.f32 %v334_v45, %v325_v47 }
 0x2a4   : > { %v350_v59 = vrot.slane %v343_v52, 1  ;;  %v363_v63 = vrot.slane %v341_v55, 2 }
 0x2a5   : > { %v345_v53 = vmul.f32 0.45186275, %v340_v49  ;;  %v359_v56 = vmul.f32 0.27406862, %v340_v49 }
 0x2a7   : > { %v353_v60 = vrot.slane %v345_v53, 1  ;;  %v366_v0 = vrot.slane %v359_v56, 2 }
 0x2af   : > { %v317_v43 = vpop.permute.xlu0 %316 }
 0x2b0   : > { %v324_v50 = vadd.f32 %v317_v43, %v306_v40 }
 0x2b7   : > { %v332_v51 = vpop.permute.xlu0 %331 }
 0x2b8   : > { %v339_v54 = vadd.f32 %v332_v51, %v324_v50 }
 0x2ba   : > { %v342_v57 = vmul.f32 0.27406862, %v339_v54  ;;  %v344_v58 = vmul.f32 0.45186275, %v339_v54 }
 0x2bc   : > { %v351_v61 = vrot.slane %v344_v58, 1  ;;  %v364_v62 = vrot.slane %v342_v57, 2 }
 0x2be   : > { %v352_v1 = vsel %vm349_vm9, %v350_v59, %v351_v61  ;;  %v354_v2 = vsel %vm349_vm9, %v351_v61, %v353_v60  ;;  %v365_v5 = vsel %vm254_vm4, %v363_v63, %v364_v62  ;;  %v367_v6 = vsel %vm254_vm4, %v364_v62, %v366_v0 }
 0x2bf   : > { %v357_v3 = vadd.f32 %v352_v1, %v341_v55  ;;  %v358_v4 = vadd.f32 %v354_v2, %v342_v57 }
 0x2c1   : > { %v370_v7 = vadd.f32 %v365_v5, %v357_v3  ;;  %v371_v8 = vadd.f32 %v367_v6, %v358_v4 }
 0x2c3   : > { %374 = vst.msk [vmem:[%s136_s4 + $0x8] sm:$0xff] %vm372_vm10, %v371_v8 }
 0x2c4   : > { %373 = vst.msk [vmem:[%s136_s4] sm:$0xff] %vm372_vm10, %v370_v7 }
 0x2c5   : > { %602 = shalt.err (!%p599_p4)
}
 0x2c6   : > { %s650_s21 = smov 128   ;;  %s651_s25 = smov 8  }
 0x2c7   : > { %488 = dma.vmem_to_hbm [thread:$0]  (%p712_p11), %s389_s10, 256, %s391_s5, %s376_s11, %s650_s21, %s650_s21, %s651_s25  }
 0x2c8 PF: > { %s405_s17 = sand.u32 1, %s629_s6   ;;  %p823_p7 = scmp.ge.s32.totalorder %s641_s9, 2 }
 0x2c9   : > { %s406_s26 = scalar_lea.sflag [#allocation6], %s405_s17 }
 0x2ca   : > { %p495_p5 = pnand %p823_p7, %p716_p12 }
 0x2cc   : > { %p496_p8 = pneg %p495_p5 }
 0x2ce   : > { %624 = dma.done.wait (%p496_p8), %s406_s26, 256  }
 0x2cf   : > { %626 = vsyncadd (%p496_p8), %s406_s26, 4294967040  ;;  %p14_p10 = scmp.ge.s32.totalorder %s687_s12, 4   ;;  %s824_s6 = smov %s633_s7 }
 0x2d0   : > { %s825_s7 = smov %s637_s8  ;;  %s826_s8 = smov %s699_s15 }
 0x2d1   : > { %s827_s9 = smov %s687_s12  ;;  %16 = sbr.rel (!%p14_p10) target bundleno = 5 (0x5), region = 72 }
 0x2d6   :  { %412 = vsyncpa [#allocation5], 1 }
 0x2d7   :  { %414 = vsyncpa [#allocation5 + $0x1], 1 }
 0x2d8   :  { %415 = vsyncpa [#allocation6], 1 }
 0x2d9   :  { %417 = vsyncpa [#allocation6 + $0x1], 1 }

</bundles_post_ra>
